<compile_context>
chip_gen: v7x
topology: tpu7x:2x2x1
jax: 0.10.0
libtpu: 0.0.40
codegen_flags: <defaults>
</compile_context>

<pallas_src>
import jax
import jax.numpy as jnp
from jax.experimental import pallas as pl
from jax.experimental.pallas import tpu as pltpu


def _round_up(x, m):
    return (x + m - 1) // m * m


def gcn_kernel(a_ref, xs_ref, dinv_ref, w_ref, b_ref, o_ref, acc_ref):
    """Accumulate (A+I) @ (dinv*x) over k-blocks; finalize with dinv, W, bias."""
    k = pl.program_id(1)

    @pl.when(k == 0)
    def _():
        acc_ref[...] = jnp.zeros_like(acc_ref)

    acc_ref[...] += jnp.dot(a_ref[...], xs_ref[...],
                            preferred_element_type=jnp.float32)

    @pl.when(k == pl.num_programs(1) - 1)
    def _():
        agg = acc_ref[...] * dinv_ref[...]                       # (tm, F_in_pad)
        out = jnp.dot(agg, w_ref[...],
                      preferred_element_type=jnp.float32) + b_ref[...]
        o_ref[...] = out.astype(o_ref.dtype)


def build_binary_adjacency_and_dinv(edge_index, num_nodes):
    """Binary (A + I) and D^{-1/2} from a (2, E) int edge_index (glue, plain JAX)."""
    src, dst = edge_index[0], edge_index[1]
    loops = jnp.arange(num_nodes, dtype=edge_index.dtype)
    src = jnp.concatenate([src, loops])
    dst = jnp.concatenate([dst, loops])
    # A[dst, src] += 1.0   (aggregation at destination, source_to_target flow)
    a = jnp.zeros((num_nodes, num_nodes), jnp.float32).at[dst, src].add(1.0)
    deg = a.sum(axis=1)                                   # in-degree of A + I
    dinv = jnp.where(deg > 0, jax.lax.rsqrt(deg), 0.0)    # masked_fill(inf, 0)
    return a, dinv


def linear_encoder_forward(x, edge_index, weight, bias, *, tile=None):
    """x: (N, F_in) f32; edge_index: (2, E) int32; weight: (F_in, F_out); bias: (F_out,)."""
    n, f_in = x.shape
    f_out = weight.shape[1]

    a, dinv = build_binary_adjacency_and_dinv(edge_index, n)

    # --- pad to lane/tile-friendly shapes ---------------------------------
    LANE = 128
    n_lane = _round_up(n, LANE)
    tile = tile or min(512, n_lane)          # A row/col tile (fits small VMEM too)
    n_pad = _round_up(n, tile)
    f_in_pad = _round_up(f_in, LANE)
    f_out_pad = _round_up(f_out, LANE)

    # Binary (A+I) padded; x pre-scaled by dinv (the other dinv scale is in-kernel).
    a_p = jnp.zeros((n_pad, n_pad), jnp.float32).at[:n, :n].set(a)
    xs_p = jnp.zeros((n_pad, f_in_pad), jnp.float32).at[:n, :f_in].set(
        x * dinv[:, None])
    dinv_p = jnp.zeros((n_pad, 1), jnp.float32).at[:n, 0].set(dinv)
    w_p = jnp.zeros((f_in_pad, f_out_pad), jnp.float32).at[:f_in, :f_out].set(weight)
    b_p = jnp.zeros((1, f_out_pad), jnp.float32).at[0, :f_out].set(bias)
    # NOTE: on v6e/v7x, a_p/xs_p could be cast to bf16 here (f32 accumulator
    # stays) to halve HBM traffic; kept f32 for bit-faithful parity.

    tm = tk = tile
    grid = (n_pad // tm, n_pad // tk)

    flops = 2 * n_pad * n_pad * f_in_pad + 2 * n_pad * f_in_pad * f_out_pad
    bytes_accessed = 4 * (n_pad * n_pad + n_pad * f_in_pad + n_pad
                          + f_in_pad * f_out_pad + f_out_pad + n_pad * f_out_pad)
    cost = pl.CostEstimate(flops=flops, transcendentals=0,
                           bytes_accessed=bytes_accessed)

    out_p = pl.pallas_call(
        gcn_kernel,
        out_shape=jax.ShapeDtypeStruct((n_pad, f_out_pad), jnp.float32),
        grid_spec=pltpu.PrefetchScalarGridSpec(
            num_scalar_prefetch=0,
            grid=grid,
            in_specs=[
                pl.BlockSpec((tm, tk), lambda i, k: (i, k)),            # (A+I) tile
                pl.BlockSpec((tk, f_in_pad), lambda i, k: (k, 0)),      # dinv*x tile
                pl.BlockSpec((tm, 1), lambda i, k: (i, 0)),             # dinv rows
                pl.BlockSpec((f_in_pad, f_out_pad), lambda i, k: (0, 0)),  # W
                pl.BlockSpec((1, f_out_pad), lambda i, k: (0, 0)),      # bias
            ],
            out_specs=pl.BlockSpec((tm, f_out_pad), lambda i, k: (i, 0)),
            scratch_shapes=[pltpu.VMEM((tm, f_in_pad), jnp.float32)],
        ),
        compiler_params=pltpu.CompilerParams(
            dimension_semantics=("parallel", "arbitrary")),
        cost_estimate=cost,
    )(a_p, xs_p, dinv_p, w_p, b_p)

    return out_p[:n, :f_out]


if __name__ == "__main__":
    key = jax.random.PRNGKey(0)
    N, IN_C, OUT_C, E = 16, 8, 32, 40

    k_x, k_e1, k_e2, k_w = jax.random.split(key, 4)
    x = jax.random.normal(k_x, (N, IN_C), dtype=jnp.float32)
    src = jax.random.randint(k_e1, (E,), 0, N, dtype=jnp.int32)
    dst = jax.random.randint(k_e2, (E,), 0, N, dtype=jnp.int32)
    edge_index = jnp.stack([src, dst], axis=0)

    # Deterministic Glorot-uniform weight (stored pre-transposed as (F_in, F_out))
    # + zero bias, matching GCNConv's Linear(glorot) + zero-initialized bias.
    limit = jnp.sqrt(6.0 / (IN_C + OUT_C))
    weight = jax.random.uniform(k_w, (IN_C, OUT_C), jnp.float32, -limit, limit)
    bias = jnp.zeros((OUT_C,), jnp.float32)

    out = linear_encoder_forward(x, edge_index, weight, bias)
    jax.block_until_ready(out)

    # Pure-JAX reference of the same semantics (dense normalized adjacency).
    a, dinv = build_binary_adjacency_and_dinv(edge_index, N)
    a_hat = dinv[:, None] * a * dinv[None, :]
    ref = a_hat @ (x @ weight) + bias[None, :]

    assert out.shape == (N, OUT_C)
    assert jnp.allclose(out, ref, atol=1e-4, rtol=1e-4)

    print("KERNEL_OK")
</pallas_src>

<mosaic_0001>
module attributes {stable_mosaic.version = 11 : i64} {
  func.func @gcn_kernel(%arg0: i32, %arg1: i32, %arg2: memref<128x128xf32, #tpu.memory_space<vmem>>, %arg3: memref<128x128xf32, #tpu.memory_space<vmem>>, %arg4: memref<128x1xf32, #tpu.memory_space<vmem>>, %arg5: memref<128x128xf32, #tpu.memory_space<vmem>>, %arg6: memref<1x128xf32, #tpu.memory_space<vmem>>, %arg7: memref<128x128xf32, #tpu.memory_space<vmem>>, %arg8: memref<128x128xf32, #tpu.memory_space<vmem>>) attributes {dimension_semantics = [#tpu.dimension_semantics<parallel>, #tpu.dimension_semantics<arbitrary>], iteration_bounds = array<i64: 1, 1>, scalar_prefetch = 0 : i64, scratch_operands = 1 : i64, tpu.core_type = #tpu.core_type<tc>, window_params = [{transform_indices = @transform_0, window_bounds = array<i64: 128, 128>}, {transform_indices = @transform_1, window_bounds = array<i64: 128, 128>}, {transform_indices = @transform_2, window_bounds = array<i64: 128, 1>}, {pipeline_mode = #tpu.pipeline_mode<synchronous>, transform_indices = @transform_3, window_bounds = array<i64: 128, 128>}, {pipeline_mode = #tpu.pipeline_mode<synchronous>, transform_indices = @transform_4, window_bounds = array<i64: 1, 128>}, {transform_indices = @transform_5, window_bounds = array<i64: 128, 128>}]} {
    %c0_i32 = arith.constant 0 : i32
    %0 = arith.cmpi eq, %arg1, %c0_i32 : i32
    %1 = arith.extui %0 : i1 to i32
    %c0_i32_0 = arith.constant 0 : i32
    %2 = arith.cmpi ne, %1, %c0_i32_0 : i32
    scf.if %2 {
      %cst_10 = arith.constant 0.000000e+00 : f32
      %12 = vector.broadcast %cst_10 : f32 to vector<128x128xf32>
      %c0_11 = arith.constant 0 : index
      %c0_12 = arith.constant 0 : index
      %13 = vector.load %arg8[%c0_11, %c0_12] : memref<128x128xf32, #tpu.memory_space<vmem>>, vector<128x128xf32>
      tpu.vector_store %arg8[%c0_11, %c0_12], %12 {strides = array<i32>} : memref<128x128xf32, #tpu.memory_space<vmem>>, vector<128x128xf32>,
    } else {
    }
    %c0 = arith.constant 0 : index
    %c0_1 = arith.constant 0 : index
    %3 = vector.load %arg8[%c0, %c0_1] : memref<128x128xf32, #tpu.memory_space<vmem>>, vector<128x128xf32>
    %c0_2 = arith.constant 0 : index
    %c0_3 = arith.constant 0 : index
    %4 = vector.load %arg2[%c0_2, %c0_3] : memref<128x128xf32, #tpu.memory_space<vmem>>, vector<128x128xf32>
    %c0_4 = arith.constant 0 : index
    %c0_5 = arith.constant 0 : index
    %5 = vector.load %arg3[%c0_4, %c0_5] : memref<128x128xf32, #tpu.memory_space<vmem>>, vector<128x128xf32>
    %cst = arith.constant dense<0.000000e+00> : vector<128x128xf32>
    %6 = tpu.matmul %4, %5, %cst {dimension_numbers = #tpu.dot_dimension_numbers<[1], [0], [0], [1], [0, 0, 1, 1], [], []>} : vector<128x128xf32>, vector<128x128xf32>, vector<128x128xf32> -> vector<128x128xf32>
    %7 = arith.addf %3, %6 : vector<128x128xf32>
    %c0_6 = arith.constant 0 : index
    %c0_7 = arith.constant 0 : index
    %8 = vector.load %arg8[%c0_6, %c0_7] : memref<128x128xf32, #tpu.memory_space<vmem>>, vector<128x128xf32>
    tpu.vector_store %arg8[%c0_6, %c0_7], %7 {strides = array<i32>} : memref<128x128xf32, #tpu.memory_space<vmem>>, vector<128x128xf32>,
    %c0_i32_8 = arith.constant 0 : i32
    %9 = arith.cmpi eq, %arg1, %c0_i32_8 : i32
    %10 = arith.extui %9 : i1 to i32
    %c0_i32_9 = arith.constant 0 : i32
    %11 = arith.cmpi ne, %10, %c0_i32_9 : i32
    scf.if %11 {
      %c0_10 = arith.constant 0 : index
      %c0_11 = arith.constant 0 : index
      %12 = vector.load %arg8[%c0_10, %c0_11] : memref<128x128xf32, #tpu.memory_space<vmem>>, vector<128x128xf32>
      %c0_12 = arith.constant 0 : index
      %c0_13 = arith.constant 0 : index
      %13 = vector.load %arg4[%c0_12, %c0_13] : memref<128x1xf32, #tpu.memory_space<vmem>>, vector<128x1xf32>
      %14 = vector.broadcast %13 : vector<128x1xf32> to vector<128x128xf32>
      %15 = arith.mulf %12, %14 : vector<128x128xf32>
      %c0_14 = arith.constant 0 : index
      %c0_15 = arith.constant 0 : index
      %16 = vector.load %arg5[%c0_14, %c0_15] : memref<128x128xf32, #tpu.memory_space<vmem>>, vector<128x128xf32>
      %cst_16 = arith.constant dense<0.000000e+00> : vector<128x128xf32>
      %17 = tpu.matmul %15, %16, %cst_16 {dimension_numbers = #tpu.dot_dimension_numbers<[1], [0], [0], [1], [0, 0, 1, 1], [], []>} : vector<128x128xf32>, vector<128x128xf32>, vector<128x128xf32> -> vector<128x128xf32>
      %c0_17 = arith.constant 0 : index
      %c0_18 = arith.constant 0 : index
      %18 = vector.load %arg6[%c0_17, %c0_18] : memref<1x128xf32, #tpu.memory_space<vmem>>, vector<1x128xf32>
      %19 = vector.broadcast %18 : vector<1x128xf32> to vector<128x128xf32>
      %20 = arith.addf %17, %19 : vector<128x128xf32>
      %c0_19 = arith.constant 0 : index
      %c0_20 = arith.constant 0 : index
      %21 = vector.load %arg7[%c0_19, %c0_20] : memref<128x128xf32, #tpu.memory_space<vmem>>, vector<128x128xf32>
      tpu.vector_store %arg7[%c0_19, %c0_20], %20 {strides = array<i32>} : memref<128x128xf32, #tpu.memory_space<vmem>>, vector<128x128xf32>,
    } else {
    }
    return
  }
  func.func @transform_0(%arg0: i32, %arg1: i32) -> (i32, i32) {
    %c0_i32 = arith.constant 0 : i32
    return %arg0, %arg1 : i32, i32
  }
  func.func @transform_1(%arg0: i32, %arg1: i32) -> (i32, i32) {
    %c0_i32 = arith.constant 0 : i32
    %c0_i32_0 = arith.constant 0 : i32
    return %arg1, %c0_i32 : i32, i32
  }
  func.func @transform_2(%arg0: i32, %arg1: i32) -> (i32, i32) {
    %c0_i32 = arith.constant 0 : i32
    %c0_i32_0 = arith.constant 0 : i32
    return %arg0, %c0_i32 : i32, i32
  }
  func.func @transform_3(%arg0: i32, %arg1: i32) -> (i32, i32) {
    %c0_i32 = arith.constant 0 : i32
    %c0_i32_0 = arith.constant 0 : i32
    %c0_i32_1 = arith.constant 0 : i32
    return %c0_i32, %c0_i32_0 : i32, i32
  }
  func.func @transform_4(%arg0: i32, %arg1: i32) -> (i32, i32) {
    %c0_i32 = arith.constant 0 : i32
    %c0_i32_0 = arith.constant 0 : i32
    %c0_i32_1 = arith.constant 0 : i32
    return %c0_i32, %c0_i32_0 : i32, i32
  }
  func.func @transform_5(%arg0: i32, %arg1: i32) -> (i32, i32) {
    %c0_i32 = arith.constant 0 : i32
    %c0_i32_0 = arith.constant 0 : i32
    return %arg0, %c0_i32 : i32, i32
  }
}

</mosaic_0001>

<bundles_post_ra>
// kernel: tpu_custom_call.1
= control target key start
LH: loop header
LB: loop body
LE: loop exit
PB: predicated region body
PF: predicated region fallthrough
CT: control target
= control target key end

     0   :  { %10 = vsyncpa [#allocation4], 0  ;;  %s1128_s0 = inlined_call_operand.vmem [shape: f32[128,128], index: 0, kind: input, shape index: {}]   ;;  %s1129_s1 = inlined_call_operand.hbm [shape: f32[128,128], index: 1, kind: input, shape index: {}]   ;;  %s1130_s2 = inlined_call_operand.vmem [shape: f32[128,1], index: 2, kind: input, shape index: {}]   ;;  %s1131_s3 = inlined_call_operand.hbm [shape: f32[128,128], index: 3, kind: input, shape index: {}]   ;;  %s1132_s4 = inlined_call_operand.vmem [shape: f32[1,128], index: 4, kind: input, shape index: {}]   ;;  %s1133_s5 = inlined_call_operand.hbm [shape: f32[128,128], index: 5, kind: output, shape index: {}]  }
   0x1   :  { %11 = vsyncpa [#allocation7], 0 }
   0x2   :  { %12 = vsyncpa [#allocation5], 0  ;;  %s948_s18 = smov [#allocation3]   ;;  %s876_s22 = scalar_lea.hbm %s1129_s1, 2048 }
   0x3   :  { %s20_s19 = sshll.u32 %s948_s18, 4  ;;  %p877_p0 = scmp.ne.s32.totalorder %s1129_s1, %s876_s22  ;;  %s21_s19 = int_to_ptr.vmem [resolvable:$true] %s20_s19 }
   0x4   :  { %p880_p1 = scmp.lt.u32.totalorder %s876_s22, %s1129_s1 }
   0x6   :  { %p882_p2 = pnand %p880_p1, %p877_p0 }
   0x8   :  { %885 = shalt.err (!%p882_p2)
}
   0x9   :  { %s886_s27 = scalar_lea.vmem %s21_s19, 2048  ;;  %p891_p4 = scmp.lt.s32.totalorder %s21_s19, %s21_s19 }
   0xa   :  { %p887_p3 = scmp.ne.s32.totalorder %s21_s19, %s886_s27  ;;  %p892_p5 = scmp.lt.s32.totalorder %s886_s27, %s886_s27 }
   0xc   :  { %p893_p6 = por %p892_p5, %p891_p4 }
   0xe   :  { %p894_p7 = pnand %p893_p6, %p887_p3 }
  0x10   :  { %897 = shalt.err (!%p894_p7)
}
  0x11   :  { %s949_s28 = smov 128   ;;  %s950_s29 = smov 8  }
  0x12   :  { %26 = dma.hbm_to_vmem [thread:$0]  %s1129_s1, 2048, %s21_s19, [#allocation4], %s949_s28, %s949_s28, %s950_s29  }
  0x13   :  { %s951_s7 = smov [#allocation6]   ;;  %s898_s11 = scalar_lea.hbm %s1131_s3, 2048 }
  0x14   :  { %s34_s8 = sshll.u32 %s951_s7, 4  ;;  %p899_p8 = scmp.ne.s32.totalorder %s1131_s3, %s898_s11  ;;  %s35_s8 = int_to_ptr.vmem [resolvable:$true] %s34_s8 }
  0x15   :  { %p902_p9 = scmp.lt.u32.totalorder %s898_s11, %s1131_s3 }
  0x17   :  { %p904_p10 = pnand %p902_p9, %p899_p8 }
  0x19   :  { %907 = shalt.err (!%p904_p10)
}
  0x1a   :  { %s908_s16 = scalar_lea.vmem %s35_s8, 2048  ;;  %p913_p12 = scmp.lt.s32.totalorder %s35_s8, %s35_s8 }
  0x1b   :  { %p909_p11 = scmp.ne.s32.totalorder %s35_s8, %s908_s16  ;;  %p914_p13 = scmp.lt.s32.totalorder %s908_s16, %s908_s16 }
  0x1d   :  { %p915_p0 = por %p914_p13, %p913_p12 }
  0x1f   :  { %p916_p1 = pnand %p915_p0, %p909_p11 }
  0x21   :  { %919 = shalt.err (!%p916_p1)
}
  0x22   :  { %40 = dma.hbm_to_vmem [thread:$0]  %s1131_s3, 2048, %s35_s8, [#allocation7], %s949_s28, %s949_s28, %s950_s29  }
  0x23   :  { %942 = dma.done.wait [#allocation4], 2048  }
  0x24   :  { %943 = vsyncadd [#allocation4], 4294965248 }
  0x25   :  { %944 = dma.done.wait [#allocation7], 2048  }
  0x26   :  { %945 = vsyncadd [#allocation7], 4294965248  ;;  %v952_v0 = vmov 0   ;;  %v101_v1 = vld [vmem:[#allocation3] sm:$0xff]  ;;  %v102_v2 = vld [vmem:[#allocation3 + $0x8] sm:$0xff] }
  0x27   :  { %874 = vset.pattern.permute.xlu0 %v952_v0  ;;  %875 = vset.pattern.permute.xlu1 %v952_v0  ;;  %v103_v3 = vld [vmem:[#allocation3 + $0x10] sm:$0xff]  ;;  %v804_v4 = vpack.c.bf16 %v102_v2, %v101_v1  ;;  %v104_v5 = vld [vmem:[#allocation3 + $0x18] sm:$0xff]  ;;  %v105_v7 = vld [vmem:[#allocation3 + $0x20] sm:$0xff] }
  0x28   :  { %v808_v6 = vpack.c.bf16 %v104_v5, %v103_v3  ;;  %v106_v8 = vld [vmem:[#allocation3 + $0x28] sm:$0xff]  ;;  %v85_v10 = vld [vmem:[%s1128_s0] sm:$0xff]  ;;  %v107_v11 = vld [vmem:[#allocation3 + $0x30] sm:$0xff] }
  0x29   :  { %805 = vmatprep.subr.bf16.mxu0 %v804_v4  ;;  %v812_v9 = vpack.c.bf16 %v106_v8, %v105_v7  ;;  %v108_v12 = vld [vmem:[#allocation3 + $0x38] sm:$0xff]  ;;  %724 = vmatprep.mubr.f32.mxu0 %v85_v10  ;;  %v109_v14 = vld [vmem:[#allocation3 + $0x40] sm:$0xff]  ;;  %v110_v15 = vld [vmem:[#allocation3 + $0x48] sm:$0xff] }
  0x2a   :  { %807 = vmatpush3.bf16.msra.mxu0 %v804_v4  ;;  %v816_v13 = vpack.c.bf16 %v108_v12, %v107_v11  ;;  %v313_v16 = vld [vmem:[%s1130_s2] sm:$0xff]  ;;  %v315_v17 = vld [vmem:[%s1130_s2 + $0x10] sm:$0xff]  ;;  %v314_v18 = vld [vmem:[%s1130_s2 + $0x8] sm:$0xff]  ;;  %v820_v19 = vpack.c.bf16 %v110_v15, %v109_v14 }
  0x2b   :  { %809 = vmatprep.subr.bf16.mxu0 %v808_v6  ;;  %331 = vperm.xlu0 %874, %v313_v16   ;;  %v316_v20 = vld [vmem:[%s1130_s2 + $0x18] sm:$0xff]  ;;  %v111_v21 = vld [vmem:[#allocation3 + $0x50] sm:$0xff]  ;;  %v317_v23 = vld [vmem:[%s1130_s2 + $0x20] sm:$0xff] }
  0x2c   :  { %341 = vperm.xlu1 %875, %v315_v17   ;;  %v112_v22 = vld [vmem:[#allocation3 + $0x58] sm:$0xff]  ;;  %v425_v24 = vld [vmem:[#allocation6] sm:$0xff]  ;;  %v426_v25 = vld [vmem:[#allocation6 + $0x8] sm:$0xff] }
  0x2d   :  { %v427_v26 = vld [vmem:[#allocation6 + $0x10] sm:$0xff]  ;;  %v824_v27 = vpack.c.bf16 %v112_v22, %v111_v21  ;;  %v318_v28 = vld [vmem:[%s1130_s2 + $0x28] sm:$0xff]  ;;  %v836_v29 = vpack.c.bf16 %v426_v25, %v425_v24  ;;  %v428_v30 = vld [vmem:[#allocation6 + $0x18] sm:$0xff] }
  0x2e   :  { %811 = vmatpush3.bf16.msra.mxu0 %v808_v6  ;;  %v113_v31 = vld [vmem:[#allocation3 + $0x60] sm:$0xff]  ;;  %v114_v32 = vld [vmem:[#allocation3 + $0x68] sm:$0xff]  ;;  %v840_v33 = vpack.c.bf16 %v428_v30, %v427_v26  ;;  %v319_v36 = vld [vmem:[%s1130_s2 + $0x30] sm:$0xff] }
  0x2f   :  { %813 = vmatprep.subr.bf16.mxu0 %v812_v9  ;;  %336 = vperm.xlu0 %874, %v314_v18   ;;  %v429_v34 = vld [vmem:[#allocation6 + $0x20] sm:$0xff]  ;;  %v430_v35 = vld [vmem:[#allocation6 + $0x28] sm:$0xff]  ;;  %v828_v37 = vpack.c.bf16 %v114_v32, %v113_v31  ;;  %v320_v38 = vld [vmem:[%s1130_s2 + $0x38] sm:$0xff] }
  0x30   :  { %346 = vperm.xlu1 %875, %v316_v20   ;;  %837 = vmatprep.subr.bf16.mxu1 %v836_v29  ;;  %v115_v39 = vld [vmem:[#allocation3 + $0x70] sm:$0xff]  ;;  %v116_v40 = vld [vmem:[#allocation3 + $0x78] sm:$0xff]  ;;  %v844_v41 = vpack.c.bf16 %v430_v35, %v429_v34  ;;  %v321_v44 = vld [vmem:[%s1130_s2 + $0x40] sm:$0xff] }
  0x31   :  { %839 = vmatpush3.bf16.msra.mxu1 %v836_v29  ;;  %v431_v42 = vld [vmem:[#allocation6 + $0x30] sm:$0xff]  ;;  %v432_v43 = vld [vmem:[#allocation6 + $0x38] sm:$0xff]  ;;  %v832_v45 = vpack.c.bf16 %v116_v40, %v115_v39  ;;  %v322_v46 = vld [vmem:[%s1130_s2 + $0x48] sm:$0xff] }
  0x32   :  { %815 = vmatpush3.bf16.msra.mxu0 %v812_v9  ;;  %841 = vmatprep.subr.bf16.mxu1 %v840_v33  ;;  %v848_v47 = vpack.c.bf16 %v432_v43, %v431_v42  ;;  %v433_v48 = vld [vmem:[#allocation6 + $0x40] sm:$0xff]  ;;  %v434_v49 = vld [vmem:[#allocation6 + $0x48] sm:$0xff]  ;;  %v323_v50 = vld [vmem:[%s1130_s2 + $0x50] sm:$0xff] }
  0x33   :  { %817 = vmatprep.subr.bf16.mxu0 %v816_v13  ;;  %351 = vperm.xlu0 %874, %v317_v23   ;;  %v324_v51 = vld [vmem:[%s1130_s2 + $0x58] sm:$0xff]  ;;  %v852_v52 = vpack.c.bf16 %v434_v49, %v433_v48  ;;  %v435_v53 = vld [vmem:[#allocation6 + $0x50] sm:$0xff]  ;;  %v86_v55 = vld [vmem:[%s1128_s0 + $0x8] sm:$0xff] }
  0x34   :  { %356 = vperm.xlu1 %875, %v318_v28   ;;  %v436_v54 = vld [vmem:[#allocation6 + $0x58] sm:$0xff]  ;;  %v325_v56 = vld [vmem:[%s1130_s2 + $0x60] sm:$0xff]  ;;  %v87_v57 = vld [vmem:[%s1128_s0 + $0x10] sm:$0xff] }
  0x35   :  { %843 = vmatpush3.bf16.msra.mxu1 %v840_v33  ;;  %v326_v58 = vld [vmem:[%s1130_s2 + $0x68] sm:$0xff]  ;;  %v856_v59 = vpack.c.bf16 %v436_v54, %v435_v53  ;;  %v437_v60 = vld [vmem:[#allocation6 + $0x60] sm:$0xff]  ;;  %v88_v62 = vld [vmem:[%s1128_s0 + $0x18] sm:$0xff] }
  0x36   :  { %819 = vmatpush3.bf16.msra.mxu0 %v816_v13  ;;  %845 = vmatprep.subr.bf16.mxu1 %v844_v41  ;;  %v438_v61 = vld [vmem:[#allocation6 + $0x68] sm:$0xff]  ;;  %v327_v63 = vld [vmem:[%s1130_s2 + $0x70] sm:$0xff]  ;;  %v89_v0 = vld [vmem:[%s1128_s0 + $0x20] sm:$0xff] }
  0x37   :  { %821 = vmatprep.subr.bf16.mxu0 %v820_v19  ;;  %361 = vperm.xlu0 %874, %v319_v36   ;;  %v328_v1 = vld [vmem:[%s1130_s2 + $0x78] sm:$0xff]  ;;  %v860_v2 = vpack.c.bf16 %v438_v61, %v437_v60  ;;  %v90_v3 = vld [vmem:[%s1128_s0 + $0x28] sm:$0xff]  ;;  %v91_v4 = vld [vmem:[%s1128_s0 + $0x30] sm:$0xff] }
  0x38   :  { %366 = vperm.xlu1 %875, %v320_v38   ;;  %v92_v5 = vld [vmem:[%s1128_s0 + $0x38] sm:$0xff]  ;;  %v93_v6 = vld [vmem:[%s1128_s0 + $0x40] sm:$0xff]  ;;  %v94_v7 = vld [vmem:[%s1128_s0 + $0x48] sm:$0xff] }
  0x39   :  { %847 = vmatpush3.bf16.msra.mxu1 %v844_v41  ;;  %v95_v8 = vld [vmem:[%s1128_s0 + $0x50] sm:$0xff]  ;;  %v96_v9 = vld [vmem:[%s1128_s0 + $0x58] sm:$0xff]  ;;  %v97_v10 = vld [vmem:[%s1128_s0 + $0x60] sm:$0xff] }
  0x3a   :  { %823 = vmatpush3.bf16.msra.mxu0 %v820_v19  ;;  %849 = vmatprep.subr.bf16.mxu1 %v848_v47  ;;  %v98_v11 = vld [vmem:[%s1128_s0 + $0x68] sm:$0xff]  ;;  %v99_v12 = vld [vmem:[%s1128_s0 + $0x70] sm:$0xff]  ;;  %v100_v13 = vld [vmem:[%s1128_s0 + $0x78] sm:$0xff] }
  0x3b   :  { %825 = vmatprep.subr.bf16.mxu0 %v824_v27  ;;  %371 = vperm.xlu0 %874, %v321_v44   ;;  %v439_v14 = vld [vmem:[#allocation6 + $0x70] sm:$0xff]  ;;  %v440_v15 = vld [vmem:[#allocation6 + $0x78] sm:$0xff] }
  0x3c   :  { %376 = vperm.xlu1 %875, %v322_v46   ;;  %v864_v16 = vpack.c.bf16 %v440_v15, %v439_v14 }
  0x3d   :  { %851 = vmatpush3.bf16.msra.mxu1 %v848_v47 }
  0x3e   :  { %827 = vmatpush3.bf16.msra.mxu0 %v824_v27  ;;  %853 = vmatprep.subr.bf16.mxu1 %v852_v52 }
  0x3f   :  { %829 = vmatprep.subr.bf16.mxu0 %v828_v37  ;;  %381 = vperm.xlu0 %874, %v323_v50  }
  0x40   :  { %386 = vperm.xlu1 %875, %v324_v51  }
  0x41   :  { %855 = vmatpush3.bf16.msra.mxu1 %v852_v52 }
  0x42   :  { %831 = vmatpush3.bf16.msra.mxu0 %v828_v37  ;;  %857 = vmatprep.subr.bf16.mxu1 %v856_v59 }
  0x43   :  { %833 = vmatprep.subr.bf16.mxu0 %v832_v45  ;;  %391 = vperm.xlu0 %874, %v325_v56  }
  0x44   :  { %396 = vperm.xlu1 %875, %v326_v58  }
  0x45   :  { %859 = vmatpush3.bf16.msra.mxu1 %v856_v59 }
  0x46   :  { %835 = vmatpush3.bf16.msra.mxu0 %v832_v45  ;;  %861 = vmatprep.subr.bf16.mxu1 %v860_v2 }
  0x47   :  { %401 = vperm.xlu0 %874, %v327_v63  }
  0x48   :  { %406 = vperm.xlu1 %875, %v328_v1   ;;  %v627_v1 = vld [vmem:[%s1132_s4] ss:$0 sm:$0xff]  ;;  %s953_s4 = smov [#allocation8]  }
  0x49   :  { %725 = vmatmul.mubr.f32.vlgmr.msra.gmra.mrb[0].mxu0 %v86_v55  ;;  %863 = vmatpush3.bf16.msra.mxu1 %v860_v2  ;;  %s614_s8 = sshll.u32 %s953_s4, 4  ;;  %s615_s8 = int_to_ptr.vmem [resolvable:$true] %s614_s8 }
  0x4a   :  { %727 = vmatprep.mubr.f32.mxu0 %v87_v57  ;;  %865 = vmatprep.subr.bf16.mxu1 %v864_v16  ;;  %s920_s9 = scalar_lea.vmem %s615_s8, 2048  ;;  %p925_p3 = scmp.lt.s32.totalorder %s615_s8, %s615_s8 }
  0x4b   :  { %p921_p2 = scmp.ne.s32.totalorder %s615_s8, %s920_s9  ;;  %p926_p4 = scmp.lt.s32.totalorder %s920_s9, %s920_s9 }
  0x4d   :  { %728 = vmatmul.mubr.f32.gmra.mrb[2].mxu0 %v88_v62  ;;  %867 = vmatpush3.bf16.msra.mxu1 %v864_v16  ;;  %p927_p5 = por %p926_p4, %p925_p3 }
  0x4e   :  { %730 = vmatprep.mubr.f32.mxu0 %v89_v0 }
  0x4f   :  { %p928_p6 = pnand %p927_p5, %p921_p2 }
  0x51   :  { %731 = vmatmul.mubr.f32.gmra.mrb[4].mxu0 %v90_v3 }
  0x52   :  { %733 = vmatprep.mubr.f32.mxu0 %v91_v4 }
  0x55   :  { %734 = vmatmul.mubr.f32.gmra.mrb[6].mxu0 %v92_v5 }
  0x56   :  { %736 = vmatprep.mubr.f32.mxu0 %v93_v6 }
  0x59   :  { %737 = vmatmul.mubr.f32.gmra.mrb[8].mxu0 %v94_v7 }
  0x5a   :  { %739 = vmatprep.mubr.f32.mxu0 %v95_v8 }
  0x5d   :  { %740 = vmatmul.mubr.f32.gmra.mrb[10].mxu0 %v96_v9 }
  0x5e   :  { %742 = vmatprep.mubr.f32.mxu0 %v97_v10 }
  0x61   :  { %743 = vmatmul.mubr.f32.gmra.mrb[12].mxu0 %v98_v11 }
  0x62   :  { %745 = vmatprep.mubr.f32.mxu0 %v99_v12 }
  0x65   :  { %746 = vmatmul.mubr.f32.gmra.mrb[14].mxu0 %v100_v13 }
  0xaa   :  { %v332_v17 = vpop.permute.xlu0 %331 }
  0xab   :  { %v342_v18 = vpop.permute.xlu1 %341 }
  0xae   :  { %v337_v19 = vpop.permute.xlu0 %336 }
  0xaf   :  { %v347_v20 = vpop.permute.xlu1 %346 }
  0xb2   :  { %v352_v21 = vpop.permute.xlu0 %351 }
  0xb3   :  { %v357_v22 = vpop.permute.xlu1 %356 }
  0xb6   :  { %v362_v28 = vpop.permute.xlu0 %361 }
  0xb7   :  { %v367_v30 = vpop.permute.xlu1 %366 }
  0xba   :  { %v372_v36 = vpop.permute.xlu0 %371 }
  0xbb   :  { %v377_v38 = vpop.permute.xlu1 %376 }
  0xbe   :  { %v382_v44 = vpop.permute.xlu0 %381 }
  0xbf   :  { %v387_v46 = vpop.permute.xlu1 %386 }
  0xc2   :  { %v392_v52 = vpop.permute.xlu0 %391 }
  0xc3   :  { %v397_v54 = vpop.permute.xlu1 %396 }
  0xc6   :  { %v402_v60 = vpop.permute.xlu0 %401 }
  0xc7   :  { %v407_v62 = vpop.permute.xlu1 %406 }
 0x11c   :  { %v726_v23 = vpop.f32.mrb[0].mxu0 }
 0x11d   :  { %v183_v24 = vpop.f32.mrb[1].mxu0  ;;  %v410_v26 = vmul.f32 %v726_v23, %v337_v19 }
 0x11e   :  { %v409_v25 = vmul.f32 %v332_v17, %v183_v24 }
 0x120   :  { %v729_v27 = vpop.f32.mrb[2].mxu0  ;;  %780 = vmatprep.mubr.f32.mxu1 %v409_v25 }
 0x121   :  { %v193_v29 = vpop.f32.mrb[3].mxu0  ;;  %781 = vmatmul.mubr.f32.vlgmr.msra.gmra.mrb[0].mxu1 %v410_v26  ;;  %v412_v32 = vmul.f32 %v729_v27, %v347_v20 }
 0x122   :  { %v411_v31 = vmul.f32 %v342_v18, %v193_v29 }
 0x124   :  { %v732_v33 = vpop.f32.mrb[4].mxu0  ;;  %783 = vmatprep.mubr.f32.mxu1 %v411_v31 }
 0x125   :  { %v203_v34 = vpop.f32.mrb[5].mxu0  ;;  %784 = vmatmul.mubr.f32.gmra.mrb[2].mxu1 %v412_v32  ;;  %v414_v37 = vmul.f32 %v732_v33, %v357_v22 }
 0x126   :  { %v413_v35 = vmul.f32 %v352_v21, %v203_v34 }
 0x128   :  { %v735_v39 = vpop.f32.mrb[6].mxu0  ;;  %786 = vmatprep.mubr.f32.mxu1 %v413_v35 }
 0x129   :  { %v213_v40 = vpop.f32.mrb[7].mxu0  ;;  %787 = vmatmul.mubr.f32.gmra.mrb[4].mxu1 %v414_v37  ;;  %v416_v42 = vmul.f32 %v735_v39, %v367_v30 }
 0x12a   :  { %v415_v41 = vmul.f32 %v362_v28, %v213_v40 }
 0x12c   :  { %v738_v43 = vpop.f32.mrb[8].mxu0  ;;  %789 = vmatprep.mubr.f32.mxu1 %v415_v41 }
 0x12d   :  { %v223_v45 = vpop.f32.mrb[9].mxu0  ;;  %790 = vmatmul.mubr.f32.gmra.mrb[6].mxu1 %v416_v42  ;;  %v418_v48 = vmul.f32 %v738_v43, %v377_v38 }
 0x12e   :  { %v417_v47 = vmul.f32 %v372_v36, %v223_v45 }
 0x130   :  { %v741_v49 = vpop.f32.mrb[10].mxu0  ;;  %792 = vmatprep.mubr.f32.mxu1 %v417_v47 }
 0x131   :  { %v233_v50 = vpop.f32.mrb[11].mxu0  ;;  %793 = vmatmul.mubr.f32.gmra.mrb[8].mxu1 %v418_v48  ;;  %v420_v53 = vmul.f32 %v741_v49, %v387_v46 }
 0x132   :  { %v419_v51 = vmul.f32 %v382_v44, %v233_v50 }
 0x134   :  { %v744_v55 = vpop.f32.mrb[12].mxu0  ;;  %795 = vmatprep.mubr.f32.mxu1 %v419_v51 }
 0x135   :  { %v243_v56 = vpop.f32.mrb[13].mxu0  ;;  %796 = vmatmul.mubr.f32.gmra.mrb[10].mxu1 %v420_v53  ;;  %v422_v58 = vmul.f32 %v744_v55, %v397_v54 }
 0x136   :  { %v421_v57 = vmul.f32 %v392_v52, %v243_v56 }
 0x138   :  { %v747_v59 = vpop.f32.mrb[14].mxu0  ;;  %798 = vmatprep.mubr.f32.mxu1 %v421_v57 }
 0x139   :  { %v253_v61 = vpop.f32.mrb[15].mxu0  ;;  %799 = vmatmul.mubr.f32.gmra.mrb[12].mxu1 %v422_v58  ;;  %v424_v0 = vmul.f32 %v747_v59, %v407_v62 }
 0x13a   :  { %v423_v63 = vmul.f32 %v402_v60, %v253_v61 }
 0x13c   :  { %801 = vmatprep.mubr.f32.mxu1 %v423_v63 }
 0x13d   :  { %802 = vmatmul.mubr.f32.gmra.mrb[14].mxu1 %v424_v0 }
 0x1f4   :  { %v782_v2 = vpop.f32.mrb[0].mxu1 }
 0x1f5   :  { %v520_v3 = vadd.f32 %v782_v2, %v627_v1  ;;  %v514_v4 = vpop.f32.mrb[1].mxu1 }
 0x1f6   :  { %v515_v5 = vadd.f32 %v627_v1, %v514_v4 }
 0x1f7   :  { %594 = vst [vmem:[#allocation8 + $0x8] sm:$0xff] %v520_v3 }
 0x1f8   :  { %593 = vst [vmem:[#allocation8] sm:$0xff] %v515_v5  ;;  %v785_v6 = vpop.f32.mrb[2].mxu1 }
 0x1f9   :  { %v530_v7 = vadd.f32 %v785_v6, %v627_v1  ;;  %v524_v8 = vpop.f32.mrb[3].mxu1 }
 0x1fa   :  { %v525_v9 = vadd.f32 %v627_v1, %v524_v8 }
 0x1fb   :  { %596 = vst [vmem:[#allocation8 + $0x18] sm:$0xff] %v530_v7 }
 0x1fc   :  { %595 = vst [vmem:[#allocation8 + $0x10] sm:$0xff] %v525_v9  ;;  %v788_v10 = vpop.f32.mrb[4].mxu1 }
 0x1fd   :  { %v540_v11 = vadd.f32 %v788_v10, %v627_v1  ;;  %v534_v12 = vpop.f32.mrb[5].mxu1 }
 0x1fe   :  { %v535_v13 = vadd.f32 %v627_v1, %v534_v12 }
 0x1ff   :  { %598 = vst [vmem:[#allocation8 + $0x28] sm:$0xff] %v540_v11 }
 0x200   :  { %597 = vst [vmem:[#allocation8 + $0x20] sm:$0xff] %v535_v13  ;;  %v791_v14 = vpop.f32.mrb[6].mxu1 }
 0x201   :  { %v550_v15 = vadd.f32 %v791_v14, %v627_v1  ;;  %v544_v16 = vpop.f32.mrb[7].mxu1 }
 0x202   :  { %v545_v17 = vadd.f32 %v627_v1, %v544_v16 }
 0x203   :  { %600 = vst [vmem:[#allocation8 + $0x38] sm:$0xff] %v550_v15 }
 0x204   :  { %599 = vst [vmem:[#allocation8 + $0x30] sm:$0xff] %v545_v17  ;;  %v794_v18 = vpop.f32.mrb[8].mxu1 }
 0x205   :  { %v560_v19 = vadd.f32 %v794_v18, %v627_v1  ;;  %v554_v20 = vpop.f32.mrb[9].mxu1 }
 0x206   :  { %v555_v21 = vadd.f32 %v627_v1, %v554_v20 }
 0x207   :  { %602 = vst [vmem:[#allocation8 + $0x48] sm:$0xff] %v560_v19 }
 0x208   :  { %601 = vst [vmem:[#allocation8 + $0x40] sm:$0xff] %v555_v21  ;;  %v797_v22 = vpop.f32.mrb[10].mxu1 }
 0x209   :  { %v570_v23 = vadd.f32 %v797_v22, %v627_v1  ;;  %v564_v24 = vpop.f32.mrb[11].mxu1 }
 0x20a   :  { %v565_v25 = vadd.f32 %v627_v1, %v564_v24 }
 0x20b   :  { %604 = vst [vmem:[#allocation8 + $0x58] sm:$0xff] %v570_v23 }
 0x20c   :  { %603 = vst [vmem:[#allocation8 + $0x50] sm:$0xff] %v565_v25  ;;  %v800_v26 = vpop.f32.mrb[12].mxu1 }
 0x20d   :  { %v580_v27 = vadd.f32 %v800_v26, %v627_v1  ;;  %v574_v28 = vpop.f32.mrb[13].mxu1 }
 0x20e   :  { %v575_v29 = vadd.f32 %v627_v1, %v574_v28 }
 0x20f   :  { %606 = vst [vmem:[#allocation8 + $0x68] sm:$0xff] %v580_v27 }
 0x210   :  { %605 = vst [vmem:[#allocation8 + $0x60] sm:$0xff] %v575_v29  ;;  %v803_v30 = vpop.f32.mrb[14].mxu1 }
 0x211   :  { %v590_v31 = vadd.f32 %v803_v30, %v627_v1  ;;  %v584_v32 = vpop.f32.mrb[15].mxu1 }
 0x212   :  { %v585_v33 = vadd.f32 %v627_v1, %v584_v32 }
 0x213   :  { %608 = vst [vmem:[#allocation8 + $0x78] sm:$0xff] %v590_v31 }
 0x214   :  { %607 = vst [vmem:[#allocation8 + $0x70] sm:$0xff] %v585_v33 }
 0x215   :  { %931 = shalt.err (!%p928_p6)
}
 0x216   :  { %s932_s12 = scalar_lea.hbm %s1133_s5, 2048 }
 0x217   :  { %p933_p7 = scmp.ne.s32.totalorder %s1133_s5, %s932_s12  ;;  %p936_p8 = scmp.lt.u32.totalorder %s932_s12, %s1133_s5 }
 0x219   :  { %p938_p9 = pnand %p936_p8, %p933_p7 }
 0x21b   :  { %941 = shalt.err (!%p938_p9)
}
 0x21c   :  { %620 = dma.vmem_to_hbm [thread:$0]  %s615_s8, 2048, %s1133_s5, [#allocation5], %s949_s28, %s949_s28, %s950_s29  }
 0x21d   :  { %946 = dma.done.wait [#allocation5], 2048  }
 0x21e   :  { %947 = vsyncadd [#allocation5], 4294965248 }
 0x21f   :  { %624 = vsyncpa [#allocation4], 1 }
 0x220   :  { %625 = vsyncpa [#allocation7], 1 }
 0x221   :  { %626 = vsyncpa [#allocation5], 1 }

</bundles_post_ra>
